<compile_context>
chip_gen: v5e
topology: v5e:2x2
jax: 0.10.0
libtpu: 0.0.40
codegen_flags: <defaults>
</compile_context>

<pallas_src>
import functools

import jax
import jax.numpy as jnp
from jax.experimental import pallas as pl
from jax.experimental.pallas import tpu as pltpu


def _round_up(x, m):
    return (x + m - 1) // m * m


def _fused_kernel(x_ref, w_ref, b_ref, o_ref, *, use_bf16):
    """Single-shot tile: y = tanh(x @ W + b).  No K grid axis."""
    mm = jnp.bfloat16 if use_bf16 else x_ref.dtype
    acc = jnp.dot(
        x_ref[...].astype(mm), w_ref[...].astype(mm),
        preferred_element_type=jnp.float32,
    )
    # Bias add (VPU) + tanh (EUP) in f32: both use VLIW slots the MXU does
    # not, so they are effectively free under an MXU-bound tile.
    o_ref[...] = jnp.tanh(acc + b_ref[...]).astype(o_ref.dtype)


def _fused_kernel_ksplit(x_ref, w_ref, b_ref, o_ref, acc_ref, *, use_bf16):
    """Fallback for very large K: resident f32 accumulator across the K axis."""
    mm = jnp.bfloat16 if use_bf16 else x_ref.dtype
    k = pl.program_id(2)

    @pl.when(k == 0)
    def _():
        acc_ref[...] = jnp.zeros_like(acc_ref)

    acc_ref[...] += jnp.dot(
        x_ref[...].astype(mm), w_ref[...].astype(mm),
        preferred_element_type=jnp.float32,
    )

    @pl.when(k == pl.num_programs(2) - 1)
    def _():
        o_ref[...] = jnp.tanh(acc_ref[...] + b_ref[...]).astype(o_ref.dtype)


def _pick(dim, cap, align):
    """Tile + padded extent for one dim: full dim if it fits the cap (no pad,
    legal via the 'block == full array dim' rule), else an aligned tile."""
    if dim <= cap:
        return dim, dim
    tile = (cap // align) * align
    return tile, _round_up(dim, tile)


def function_module_forward(x, w, b, *, use_bf16=True,
                            vmem_budget_bytes=28 * 1024 * 1024):
    """Pallas equivalent of FunctionModule.forward -> list of outputs.

    Computes tanh(x @ W + b) with a tiled, pipelined Pallas kernel.
    """
    batch, in_f = x.shape
    in_f2, out_f = w.shape
    assert in_f == in_f2 and b.shape == (out_f,)
    out_dtype = x.dtype
    out_itemsize = jnp.dtype(out_dtype).itemsize

    # ---- tile selection ------------------------------------------------
    # M aligns to 8 (sublanes); N/K use 256 granularity when split so the
    # 2x256^2 MXU of v6e/v7x stays fully occupied (128 would also be legal).
    tm, mp = _pick(batch, 1024, 8)
    tn, np_ = _pick(out_f, 1024, 256)
    tk, kp = _pick(in_f, 4096, 256)   # prefer full-K collapse

    def footprint(tm_, tn_, tk_, ksplit):
        in_b = x.dtype.itemsize
        buf = (2 * (tm_ * tk_ + tk_ * tn_) * in_b      # double-buffered inputs
               + 2 * tm_ * tn_ * out_itemsize           # double-buffered output
               + 2 * tn_ * 4)                           # bias
        if ksplit:
            buf += tm_ * tn_ * 4                        # accumulator scratch
        return buf

    # Shrink tiles until the double-buffered footprint fits the VMEM budget.
    while footprint(tm, tn, tk, tk < kp) > vmem_budget_bytes:
        if tk >= max(tm, tn) and tk > 512:
            tk = _round_up(tk // 2, 256)
            kp = _round_up(in_f, tk)
        elif tm >= tn and tm > 256:
            tm = _round_up(tm // 2, 8)
            mp = _round_up(batch, tm)
        elif tn > 256:
            tn = _round_up(tn // 2, 256)
            np_ = _round_up(out_f, tn)
        else:
            break

    # v7x megacore: keep at least one parallel grid axis with extent >= 2
    # (only when the batch splits evenly, so no padding is introduced).
    if (mp // tm) * (np_ // tn) == 1 and batch >= 16 and batch % 16 == 0:
        tm = batch // 2
        mp = batch

    ksplit = tk < kp
    grid_m, grid_n, grid_k = mp // tm, np_ // tn, kp // tk

    # ---- conditional padding (only when a split dim is unaligned) -------
    xp = x if (mp, kp) == (batch, in_f) else jnp.pad(
        x, ((0, mp - batch), (0, kp - in_f)))
    wp = w if (kp, np_) == (in_f, out_f) else jnp.pad(
        w, ((0, kp - in_f), (0, np_ - out_f)))
    bp = b.astype(jnp.float32).reshape(1, out_f)
    if np_ != out_f:
        bp = jnp.pad(bp, ((0, 0), (0, np_ - out_f)))

    cost = pl.CostEstimate(
        flops=2 * batch * in_f * out_f,
        transcendentals=batch * out_f,
        bytes_accessed=(x.size * x.dtype.itemsize + w.size * w.dtype.itemsize
                        + b.size * 4 + batch * out_f * out_itemsize),
    )

    if not ksplit:
        kernel = functools.partial(_fused_kernel, use_bf16=use_bf16)
        grid = (grid_m, grid_n)
        in_specs = [
            pl.BlockSpec((tm, tk), lambda i, j: (i, 0)),   # x tile (full K)
            pl.BlockSpec((tk, tn), lambda i, j: (0, j)),   # W tile (full K)
            pl.BlockSpec((1, tn), lambda i, j: (0, j)),    # bias tile
        ]
        out_specs = pl.BlockSpec((tm, tn), lambda i, j: (i, j))
        scratch = []
        sem = ("parallel", "parallel")
    else:
        kernel = functools.partial(_fused_kernel_ksplit, use_bf16=use_bf16)
        grid = (grid_m, grid_n, grid_k)
        in_specs = [
            pl.BlockSpec((tm, tk), lambda i, j, k: (i, k)),
            pl.BlockSpec((tk, tn), lambda i, j, k: (k, j)),
            pl.BlockSpec((1, tn), lambda i, j, k: (0, j)),
        ]
        out_specs = pl.BlockSpec((tm, tn), lambda i, j, k: (i, j))
        scratch = [pltpu.VMEM((tm, tn), jnp.float32)]
        sem = ("parallel", "parallel", "arbitrary")

    out_p = pl.pallas_call(
        kernel,
        out_shape=jax.ShapeDtypeStruct((mp, np_), out_dtype),
        grid_spec=pltpu.PrefetchScalarGridSpec(
            num_scalar_prefetch=0,
            grid=grid,
            in_specs=in_specs,
            out_specs=out_specs,
            scratch_shapes=scratch,
        ),
        compiler_params=pltpu.CompilerParams(
            dimension_semantics=sem,
            vmem_limit_bytes=48 * 1024 * 1024,
        ),
        cost_estimate=cost,
    )(xp, wp, bp)

    out = out_p if (mp, np_) == (batch, out_f) else out_p[:batch, :out_f]
    # FunctionModule returns a list of output tensors.
    return [out]


def _reference(x, w, b, use_bf16=True):
    """Pure-JAX reference of the same function graph (matching precision)."""
    dt = jnp.bfloat16 if use_bf16 else x.dtype
    acc = jnp.dot(x.astype(dt), w.astype(dt), preferred_element_type=jnp.float32)
    return jnp.tanh(acc + b.astype(jnp.float32)[None, :]).astype(x.dtype)


if __name__ == "__main__":
    key = jax.random.PRNGKey(0)
    k_x, k_w, k_b, k_x2, k_w2, k_b2 = jax.random.split(key, 6)

    # Small, module-scale, unaligned shapes: exercises the no-pad single-block
    # path (block_shape == full array dims, one grid step, zero extra HBM passes).
    batch, in_features, out_features = 8, 48, 32
    x = jax.random.normal(k_x, (batch, in_features), dtype=jnp.float32)
    w = jax.random.normal(k_w, (in_features, out_features), dtype=jnp.float32) * 0.1
    b = jax.random.normal(k_b, (out_features,), dtype=jnp.float32) * 0.1

    outputs = function_module_forward(x, w, b)
    jax.block_until_ready(outputs)
    ref = _reference(x, w, b)
    assert outputs[0].shape == (batch, out_features)
    assert jnp.allclose(outputs[0], ref, atol=1e-2, rtol=1e-2)

    # Moderate, MXU-friendly shapes: exercises the tiled path with the K axis
    # collapsed into a single dot and the M axis split across >= 2 blocks so
    # both v7x TensorCores get work (no padding needed for these sizes).
    batch2, in_f2, out_f2 = 512, 384, 256
    x2 = jax.random.normal(k_x2, (batch2, in_f2), dtype=jnp.float32)
    w2 = jax.random.normal(k_w2, (in_f2, out_f2), dtype=jnp.float32) * 0.05
    b2 = jax.random.normal(k_b2, (out_f2,), dtype=jnp.float32) * 0.1

    outputs2 = function_module_forward(x2, w2, b2)
    jax.block_until_ready(outputs2)
    ref2 = _reference(x2, w2, b2)
    assert outputs2[0].shape == (batch2, out_f2)
    assert jnp.allclose(outputs2[0], ref2, atol=1e-2, rtol=1e-2)

    print("KERNEL_OK")
</pallas_src>

<mosaic_0001>
module attributes {stable_mosaic.version = 11 : i64} {
  func.func @_fused_kernel(%arg0: i32, %arg1: i32, %arg2: memref<8x48xf32, #tpu.memory_space<vmem>>, %arg3: memref<48x32xf32, #tpu.memory_space<vmem>>, %arg4: memref<1x32xf32, #tpu.memory_space<vmem>>, %arg5: memref<8x32xf32, #tpu.memory_space<vmem>>) attributes {dimension_semantics = [#tpu.dimension_semantics<parallel>, #tpu.dimension_semantics<parallel>], iteration_bounds = array<i64: 1, 1>, scalar_prefetch = 0 : i64, scratch_operands = 0 : i64, tpu.core_type = #tpu.core_type<tc>, window_params = [{transform_indices = @transform_0, window_bounds = array<i64: 8, 48>}, {transform_indices = @transform_1, window_bounds = array<i64: 48, 32>}, {transform_indices = @transform_2, window_bounds = array<i64: 1, 32>}, {transform_indices = @transform_3, window_bounds = array<i64: 8, 32>}]} {
    %c0 = arith.constant 0 : index
    %c0_0 = arith.constant 0 : index
    %0 = vector.load %arg2[%c0, %c0_0] : memref<8x48xf32, #tpu.memory_space<vmem>>, vector<8x48xf32>
    %1 = arith.truncf %0 : vector<8x48xf32> to vector<8x48xbf16>
    %c0_1 = arith.constant 0 : index
    %c0_2 = arith.constant 0 : index
    %2 = vector.load %arg3[%c0_1, %c0_2] : memref<48x32xf32, #tpu.memory_space<vmem>>, vector<48x32xf32>
    %3 = arith.truncf %2 : vector<48x32xf32> to vector<48x32xbf16>
    %cst = arith.constant dense<0.000000e+00> : vector<8x32xf32>
    %4 = tpu.matmul %1, %3, %cst {dimension_numbers = #tpu.dot_dimension_numbers<[1], [0], [0], [1], [0, 0, 1, 1], [], []>} : vector<8x48xbf16>, vector<48x32xbf16>, vector<8x32xf32> -> vector<8x32xf32>
    %c0_3 = arith.constant 0 : index
    %c0_4 = arith.constant 0 : index
    %5 = vector.load %arg4[%c0_3, %c0_4] : memref<1x32xf32, #tpu.memory_space<vmem>>, vector<1x32xf32>
    %6 = vector.broadcast %5 : vector<1x32xf32> to vector<8x32xf32>
    %7 = arith.addf %4, %6 : vector<8x32xf32>
    %8 = math.tanh %7 : vector<8x32xf32>
    %c0_5 = arith.constant 0 : index
    %c0_6 = arith.constant 0 : index
    %9 = vector.load %arg5[%c0_5, %c0_6] : memref<8x32xf32, #tpu.memory_space<vmem>>, vector<8x32xf32>
    tpu.vector_store %arg5[%c0_5, %c0_6], %8 {strides = array<i32>} : memref<8x32xf32, #tpu.memory_space<vmem>>, vector<8x32xf32>,
    return
  }
  func.func @transform_0(%arg0: i32, %arg1: i32) -> (i32, i32) {
    %c0_i32 = arith.constant 0 : i32
    %c0_i32_0 = arith.constant 0 : i32
    return %arg0, %c0_i32 : i32, i32
  }
  func.func @transform_1(%arg0: i32, %arg1: i32) -> (i32, i32) {
    %c0_i32 = arith.constant 0 : i32
    %c0_i32_0 = arith.constant 0 : i32
    return %c0_i32, %arg1 : i32, i32
  }
  func.func @transform_2(%arg0: i32, %arg1: i32) -> (i32, i32) {
    %c0_i32 = arith.constant 0 : i32
    %c0_i32_0 = arith.constant 0 : i32
    return %c0_i32, %arg1 : i32, i32
  }
  func.func @transform_3(%arg0: i32, %arg1: i32) -> (i32, i32) {
    %c0_i32 = arith.constant 0 : i32
    return %arg0, %arg1 : i32, i32
  }
}

</mosaic_0001>

<bundles_post_ra>
// kernel: tpu_custom_call.1
= control target key start
LH: loop header
LB: loop body
LE: loop exit
PB: predicated region body
PF: predicated region fallthrough
CT: control target
= control target key end

     0   :  { %s146_s0 = inlined_call_operand.vmem [shape: f32[8,48], index: 0, kind: input, shape index: {}]   ;;  %s147_s1 = inlined_call_operand.vmem [shape: f32[48,32], index: 1, kind: input, shape index: {}]   ;;  %s148_s2 = inlined_call_operand.vmem [shape: f32[1,32], index: 2, kind: input, shape index: {}]   ;;  %s149_s3 = inlined_call_operand.hbm [shape: f32[8,32], index: 3, kind: output, shape index: {}]  }
   0x1   :  { %v22_v0 = vld [vmem:[%s147_s1 + $0x20] sm:$0xff]  ;;  %v23_v1 = vld [vmem:[%s147_s1 + $0x28] sm:$0xff]  ;;  %v20_v2 = vld [vmem:[%s147_s1 + $0x10] sm:$0xff] }
   0x2   :  { %v26_v3 = vpack.c.bf16 %v23_v1, %v22_v0  ;;  %v21_v4 = vld [vmem:[%s147_s1 + $0x18] sm:$0xff] }
   0x3   :  { %v25_v5 = vpack.c.bf16 %v21_v4, %v20_v2 }
   0x4   :  { %40 = vmatpush.bf16.msra.mxu0 %v26_v3 }
   0x5   :  { %8 = vsyncpa [#allocation3], 0  ;;  %v18_v6 = vld [vmem:[%s147_s1] sm:$0xff]  ;;  %v19_v7 = vld [vmem:[%s147_s1 + $0x8] sm:$0xff]  ;;  %vm31_vm0 = vcmask 392192   ;;  %s98_s28 = smov [#allocation2]  }
   0x6   :  { %v24_v8 = vpack.c.bf16 %v19_v7, %v18_v6  ;;  %v16_v9 = vld [vmem:[%s146_s0] sm:$0xff]  ;;  %s56_s29 = sshll.u32 %s98_s28, 4  ;;  %s58_s4 = sshll.u32 %s149_s3, 4  ;;  %vm49_vm1 = vcmask 261120   ;;  %s57_s29 = int_to_ptr.vmem [resolvable:$true] %s56_s29  ;;  %s59_s4 = int_to_ptr.hbm [resolvable:$true] %s58_s4 }
   0x7   :  { %v17_v10 = vpack.c.bf16 %v16_v9, %v16_v9  ;;  %v69_v11 = vld [vmem:[%s148_s2] ss:$0 sm:$0xff] }
   0x8   :  { %41 = vmatpush.bf16.msra.mxu0 %v25_v5 }
   0xc   :  { %42 = vmatpush.bf16.msra.mxu0 %v24_v8 }
   0xf   :  { %67 = vmatmul.msk.bf16.vlgmr.msra.gmra.mxu0 %vm31_vm0, %v17_v10 }
  0x8c   :  { %v44_v12 = vpop.f32.mrf.mxu0 }
  0x8d   :  { %v45_v13 = vadd.f32 %v69_v11, %v44_v12 }
  0x8f   :  { %70 = vtanh.f32 %v45_v13 }
  0x94   :  { %v46_v14 = vpop.f32.mrf.mxu0 }
  0x95   :  { %v71_v15 = vpop.eup %70 }
  0x96   :  { %50 = vst.msk [vmem:[#allocation2] sm:$0xff] %vm49_vm1, %v71_v15 }
  0x97   :  { %61 = dma.vmem_to_hbm [thread:$0]  %s57_s29, 128, %s59_s4, [#allocation3]  }
  0x98   :  { %96 = dma.done.wait [#allocation3], 128  }
  0x99   :  { %97 = vsyncadd [#allocation3], 4294967168 }
  0x9a   :  { %66 = vsyncpa [#allocation3], 1 }

</bundles_post_ra>
